<compile_context>
chip_gen: v6e
topology: v6e:2x2x1
jax: 0.10.0
libtpu: 0.0.40
codegen_flags: <defaults>
</compile_context>

<pallas_src>
import functools
import numpy as np
import jax
import jax.numpy as jnp
from jax import lax
from jax.experimental import pallas as pl
from jax.experimental.pallas import tpu as pltpu

TEMP = 0.1


def _contrastive_kernel(scal_ref, anchor_ref, featk_ref, epos_ref, out_ref,
                        nsum_ref, *, inv_temp):
    # scal_ref:   (4,) SMEM int32: [n_neg, n_kv_tiles, n_anchor_tiles, kv_last]
    # anchor_ref: (TM, C)  compacted anchor-row tile (constant across kv axis)
    # featk_ref:  (TN, C)  compacted negative-row tile (varies with kv axis)
    # epos_ref:   (1, TM)  hoisted exp(<anchor_i, pos_feat>/temp)
    # out_ref:    (1, TM)  lane-dense per-anchor loss for this tile
    # nsum_ref:   (1, TM)  VMEM accumulator of sum_j exp(sim_ij) over negatives
    i = pl.program_id(0)
    k = pl.program_id(1)
    tn = featk_ref.shape[0]

    n_neg = scal_ref[0]
    n_kv_tiles = scal_ref[1]
    n_anchor_tiles = scal_ref[2]

    @pl.when(k == 0)
    def _init():
        nsum_ref[...] = jnp.zeros_like(nsum_ref)

    # Only tiles that contain real anchors AND real negatives do work.
    @pl.when(jnp.logical_and(i < n_anchor_tiles, k < n_kv_tiles))
    def _accumulate():
        # Fold 1/temp into the small (TM, C) anchor tile (2 vregs) instead of
        # scaling the big (TN, TM) sim matrix (TN*TM/1024 vregs).
        anchor = anchor_ref[...] * inv_temp            # (TM, C) f32
        featk = featk_ref[...]                         # (TN, C) f32

        # sim[j, i] = <feat_j, anchor_i> / temp  -> (TN, TM); contraction over
        # the channel (minor) dim of both operands (no in-kernel transpose).
        # C=4, so this MXU dot is tiny; the heavy exp/reduce below stays in
        # exact f32 on the EUP/VPU (no implicit bf16 truncation of the sum).
        sim = lax.dot_general(
            featk, anchor, (((1,), (1,)), ((), ())),
            preferred_element_type=jnp.float32)

        # Validity mask for the zero-padded tail of the compacted negative
        # buffer, built in-kernel from an iota — no mask array is DMA'd.
        row = k * tn + lax.broadcasted_iota(jnp.int32, (tn, 1), 0)
        valid = (row < n_neg).astype(jnp.float32)      # (TN, 1)

        # Precision-safe masked reduction on the VPU (+ one sublane reduce):
        # keeps the (TN, TM) exp stream off the MXU push slot.
        nsum_ref[...] += jnp.sum(jnp.exp(sim) * valid, axis=0, keepdims=True)

    @pl.when(k == pl.num_programs(1) - 1)
    def _finalize():
        e_pos = epos_ref[...]                          # (1, TM)
        # Matches the unstabilized PyTorch formula (no log-sum-exp shift).
        out_ref[...] = e_pos / (e_pos + nsum_ref[...])


def contrastive_loss_pallas(feat_nchw, anchor_mask, pos_mask, neg_mask,
                            temp=TEMP, tm=256, tn=4096):
    """Returns (loss_padded, n_anchor).

    loss_padded has shape (N,); loss_padded[:n_anchor] equals the PyTorch
    forward output (per-anchor loss, in original anchor-row order); the tail
    is padding from skipped / partial tiles and must be ignored.
    """
    B, C, H, W = feat_nchw.shape
    N = B * H * W

    tm = min(tm, N)
    tn = min(tn, N)
    assert N % tm == 0 and tm % 8 == 0, "tm must divide N and be a multiple of 8"
    assert N % tn == 0 and tn % 128 == 0, "tn must divide N and be a multiple of 128"
    # v7x megacore: keep N // tm >= 2 so the "parallel" anchor axis can split
    # across both TensorCores.

    # NCHW -> NHWC -> (N, C).  Channels stay unpadded (C=4) in HBM: feat DMA
    # traffic is N*C*4 bytes per stream, no 32x lane-padding amplification.
    feat = jnp.transpose(feat_nchw, (0, 2, 3, 1)).reshape(N, C).astype(jnp.float32)
    am = anchor_mask.reshape(N).astype(bool)
    pm = pos_mask.reshape(N).astype(jnp.float32)
    nm = neg_mask.reshape(N).astype(bool)

    # Positive prototype hoisted to XLA as an exact f32 elementwise reduce
    # (C=4), avoiding XLA's default bf16 matmul truncation.
    # NOTE: empty pos mask -> 0/0 -> NaN, same as PyTorch.
    pos_cnt = jnp.sum(pm)
    pos_feat = jnp.sum(feat * pm[:, None], axis=0) / pos_cnt        # (C,)

    # Wrapper-side compaction (stable sort keeps original row order for the
    # selected rows, so the output matches feat[anchor_mask] ordering).
    anchor_perm = jnp.argsort((~am).astype(jnp.int32))
    neg_perm = jnp.argsort((~nm).astype(jnp.int32))
    anchor_rows = jnp.take(feat, anchor_perm, axis=0)                # (N, C)
    neg_rows = jnp.take(feat, neg_perm, axis=0)                      # (N, C)
    n_anchor = jnp.sum(am.astype(jnp.int32))
    n_neg = jnp.sum(nm.astype(jnp.int32))

    # Hoisted exp(pos logit) for the compacted anchor order (exact f32).
    e_pos = jnp.exp(jnp.sum(anchor_rows * pos_feat[None, :], axis=1)
                    / temp).reshape(1, N)

    n_kv_tiles = (n_neg + tn - 1) // tn
    n_anchor_tiles = (n_anchor + tm - 1) // tm
    kv_last = jnp.maximum(n_kv_tiles - 1, 0)      # clamp target for index_map
    scal = jnp.stack([n_neg, n_kv_tiles, n_anchor_tiles, kv_last]).astype(jnp.int32)

    def featk_index_map(i, k, s):
        # Past-the-end kv tiles (and all tiles of anchor tiles that are fully
        # padding) map to an already-fetched block -> no extra DMA is issued.
        kv = jnp.minimum(k, s[3])
        return (jnp.where(i < s[2], kv, 0), 0)

    kernel = functools.partial(_contrastive_kernel, inv_temp=1.0 / temp)

    out = pl.pallas_call(
        kernel,
        out_shape=jax.ShapeDtypeStruct((1, N), jnp.float32),
        grid_spec=pltpu.PrefetchScalarGridSpec(
            num_scalar_prefetch=1,
            grid=(N // tm, N // tn),              # (anchor tiles, kv tiles)
            in_specs=[
                pl.BlockSpec((tm, C), lambda i, k, s: (i, 0)),   # anchor rows
                pl.BlockSpec((tn, C), featk_index_map),          # negative rows
                pl.BlockSpec((1, tm), lambda i, k, s: (0, i)),   # exp(pos logit)
            ],
            out_specs=pl.BlockSpec((1, tm), lambda i, k, s: (0, i)),
            scratch_shapes=[pltpu.VMEM((1, tm), jnp.float32)],
        ),
        compiler_params=pltpu.CompilerParams(
            dimension_semantics=("parallel", "arbitrary"),
            # ~16-20 MiB live at tm=256/tn=4096; 48 MiB leaves headroom while
            # staying under v7x's 64 MiB physical VMEM (v5e/v6e have 128 MiB).
            vmem_limit_bytes=48 * 1024 * 1024),
    )(scal, anchor_rows, neg_rows, e_pos)

    return out[0], n_anchor


def contrastive_loss_reference(feat_nchw, anchor_mask, pos_mask, neg_mask,
                               temp=TEMP):
    """Pure-numpy reproduction of the PyTorch forward (anchor-gathered)."""
    f = np.asarray(feat_nchw, dtype=np.float32)
    B, C, H, W = f.shape
    feat = np.transpose(f, (0, 2, 3, 1)).reshape(-1, C)
    am = np.asarray(anchor_mask).reshape(-1).astype(bool)
    pm = np.asarray(pos_mask).reshape(-1).astype(bool)
    nm = np.asarray(neg_mask).reshape(-1).astype(bool)
    anchor_all = feat[am]
    pos_all = feat[pm]
    neg_all = feat[nm]
    pos_feat = pos_all.mean(0, keepdims=True)
    pos = anchor_all @ pos_feat.T / temp
    neg = anchor_all @ neg_all.T / temp
    loss = np.exp(pos) / (np.exp(pos) + np.exp(neg).sum(-1, keepdims=True))
    return loss.mean(-1)


if __name__ == "__main__":
    B, C, H, W = 2, 4, 16, 16
    key = jax.random.PRNGKey(0)
    k_feat, k_a, k_p, k_n = jax.random.split(key, 4)

    # small-magnitude features so the unstabilized exp() matches PyTorch w/o overflow
    feat = 0.05 * jax.random.normal(k_feat, (B, C, H, W), jnp.float32)
    anchor_mask = jax.random.bernoulli(k_a, 0.3, (B, 1, H, W))
    pos_mask = jax.random.bernoulli(k_p, 0.3, (B, 1, H, W))
    neg_mask = jax.random.bernoulli(k_n, 0.3, (B, 1, H, W))

    # tm=tn=128 at this toy size (N=512) so the kv accumulation, the
    # partial-tile iota mask and the anchor/kv tile skipping are all exercised.
    loss_padded, n_anchor = contrastive_loss_pallas(
        feat, anchor_mask, pos_mask, neg_mask, tm=128, tn=128)
    loss_padded = jax.block_until_ready(loss_padded)

    got = np.asarray(loss_padded)[: int(n_anchor)]
    want = contrastive_loss_reference(feat, anchor_mask, pos_mask, neg_mask)

    np.testing.assert_allclose(got, want, rtol=1e-4, atol=1e-6)
    print("KERNEL_OK")
</pallas_src>

<mosaic_0001>
module attributes {stable_mosaic.version = 11 : i64} {
  func.func @_contrastive_kernel(%arg0: i32, %arg1: i32, %arg2: memref<4xi32, #tpu.memory_space<smem>>, %arg3: memref<128x4xf32, #tpu.memory_space<vmem>>, %arg4: memref<128x4xf32, #tpu.memory_space<vmem>>, %arg5: memref<1x128xf32, #tpu.memory_space<vmem>>, %arg6: memref<1x128xf32, #tpu.memory_space<vmem>>, %arg7: memref<1x128xf32, #tpu.memory_space<vmem>>) attributes {dimension_semantics = [#tpu.dimension_semantics<parallel>, #tpu.dimension_semantics<arbitrary>], iteration_bounds = array<i64: 4, 4>, scalar_prefetch = 1 : i64, scratch_operands = 1 : i64, tpu.core_type = #tpu.core_type<tc>, window_params = [{transform_indices = @transform_0, window_bounds = array<i64: 128, 4>}, {transform_indices = @transform_1, window_bounds = array<i64: 128, 4>}, {transform_indices = @transform_2, window_bounds = array<i64: 1, 128>}, {transform_indices = @transform_3, window_bounds = array<i64: 1, 128>}]} {
    %c0 = arith.constant 0 : index
    %0 = memref.load %arg2[%c0] : memref<4xi32, #tpu.memory_space<smem>>
    %c1 = arith.constant 1 : index
    %1 = memref.load %arg2[%c1] : memref<4xi32, #tpu.memory_space<smem>>
    %c2 = arith.constant 2 : index
    %2 = memref.load %arg2[%c2] : memref<4xi32, #tpu.memory_space<smem>>
    %c0_i32 = arith.constant 0 : i32
    %3 = arith.cmpi eq, %arg1, %c0_i32 : i32
    %4 = arith.extui %3 : i1 to i32
    %c0_i32_0 = arith.constant 0 : i32
    %5 = arith.cmpi ne, %4, %c0_i32_0 : i32
    scf.if %5 {
      %cst = arith.constant 0.000000e+00 : f32
      %14 = vector.broadcast %cst : f32 to vector<1x128xf32>
      %c0_3 = arith.constant 0 : index
      %c0_4 = arith.constant 0 : index
      %15 = vector.load %arg7[%c0_3, %c0_4] : memref<1x128xf32, #tpu.memory_space<vmem>>, vector<1x128xf32>
      tpu.vector_store %arg7[%c0_3, %c0_4], %14 {strides = array<i32>} : memref<1x128xf32, #tpu.memory_space<vmem>>, vector<1x128xf32>,
    } else {
    }
    %6 = arith.cmpi slt, %arg0, %2 : i32
    %7 = arith.cmpi slt, %arg1, %1 : i32
    %8 = arith.andi %6, %7 : i1
    %9 = arith.extui %8 : i1 to i32
    %c0_i32_1 = arith.constant 0 : i32
    %10 = arith.cmpi ne, %9, %c0_i32_1 : i32
    scf.if %10 {
      %c0_3 = arith.constant 0 : index
      %c0_4 = arith.constant 0 : index
      %14 = vector.load %arg3[%c0_3, %c0_4] : memref<128x4xf32, #tpu.memory_space<vmem>>, vector<128x4xf32>
      %cst = arith.constant 1.000000e+01 : f32
      %15 = vector.broadcast %cst : f32 to vector<128x4xf32>
      %16 = arith.mulf %14, %15 : vector<128x4xf32>
      %c0_5 = arith.constant 0 : index
      %c0_6 = arith.constant 0 : index
      %17 = vector.load %arg4[%c0_5, %c0_6] : memref<128x4xf32, #tpu.memory_space<vmem>>, vector<128x4xf32>
      %cst_7 = arith.constant dense<0.000000e+00> : vector<128x128xf32>
      %18 = tpu.matmul %17, %16, %cst_7 {dimension_numbers = #tpu.dot_dimension_numbers<[1], [1], [0], [0], [0, 0, 1, 0], [], []>} : vector<128x4xf32>, vector<128x4xf32>, vector<128x128xf32> -> vector<128x128xf32>
      %c128_i32 = arith.constant 128 : i32
      %19 = arith.muli %arg1, %c128_i32 : i32
      %20 = tpu.iota {dimensions = array<i32: 0>} : vector<128x1xi32>
      %21 = vector.broadcast %19 : i32 to vector<128x1xi32>
      %22 = arith.addi %21, %20 : vector<128x1xi32>
      %23 = vector.broadcast %0 : i32 to vector<128x1xi32>
      %24 = arith.cmpi slt, %22, %23 : vector<128x1xi32>
      %25 = arith.extui %24 : vector<128x1xi1> to vector<128x1xi32>
      %26 = arith.sitofp %25 : vector<128x1xi32> to vector<128x1xf32>
      %c0_8 = arith.constant 0 : index
      %c0_9 = arith.constant 0 : index
      %27 = vector.load %arg7[%c0_8, %c0_9] : memref<1x128xf32, #tpu.memory_space<vmem>>, vector<1x128xf32>
      %28 = math.exp %18 : vector<128x128xf32>
      %29 = vector.broadcast %26 : vector<128x1xf32> to vector<128x128xf32>
      %30 = arith.mulf %28, %29 : vector<128x128xf32>
      %cst_10 = arith.constant dense<0.000000e+00> : vector<128xf32>
      %31 = vector.multi_reduction <add>, %30, %cst_10 [0] : vector<128x128xf32> to vector<128xf32>
      %32 = vector.shape_cast %31 : vector<128xf32> to vector<1x128xf32>
      %33 = arith.addf %27, %32 : vector<1x128xf32>
      %c0_11 = arith.constant 0 : index
      %c0_12 = arith.constant 0 : index
      %34 = vector.load %arg7[%c0_11, %c0_12] : memref<1x128xf32, #tpu.memory_space<vmem>>, vector<1x128xf32>
      tpu.vector_store %arg7[%c0_11, %c0_12], %33 {strides = array<i32>} : memref<1x128xf32, #tpu.memory_space<vmem>>, vector<1x128xf32>,
    } else {
    }
    %c3_i32 = arith.constant 3 : i32
    %11 = arith.cmpi eq, %arg1, %c3_i32 : i32
    %12 = arith.extui %11 : i1 to i32
    %c0_i32_2 = arith.constant 0 : i32
    %13 = arith.cmpi ne, %12, %c0_i32_2 : i32
    scf.if %13 {
      %c0_3 = arith.constant 0 : index
      %c0_4 = arith.constant 0 : index
      %14 = vector.load %arg5[%c0_3, %c0_4] : memref<1x128xf32, #tpu.memory_space<vmem>>, vector<1x128xf32>
      %c0_5 = arith.constant 0 : index
      %c0_6 = arith.constant 0 : index
      %15 = vector.load %arg7[%c0_5, %c0_6] : memref<1x128xf32, #tpu.memory_space<vmem>>, vector<1x128xf32>
      %16 = arith.addf %14, %15 : vector<1x128xf32>
      %17 = arith.divf %14, %16 : vector<1x128xf32>
      %c0_7 = arith.constant 0 : index
      %c0_8 = arith.constant 0 : index
      %18 = vector.load %arg6[%c0_7, %c0_8] : memref<1x128xf32, #tpu.memory_space<vmem>>, vector<1x128xf32>
      tpu.vector_store %arg6[%c0_7, %c0_8], %17 {strides = array<i32>} : memref<1x128xf32, #tpu.memory_space<vmem>>, vector<1x128xf32>,
    } else {
    }
    return
  }
  func.func @transform_0(%arg0: i32, %arg1: i32, %arg2: memref<4xi32, #tpu.memory_space<smem>>) -> (i32, i32) {
    %c0_i32 = arith.constant 0 : i32
    %c0_i32_0 = arith.constant 0 : i32
    return %arg0, %c0_i32 : i32, i32
  }
  func.func @transform_1(%arg0: i32, %arg1: i32, %arg2: memref<4xi32, #tpu.memory_space<smem>>) -> (i32, i32) {
    %c3 = arith.constant 3 : index
    %0 = memref.load %arg2[%c3] : memref<4xi32, #tpu.memory_space<smem>>
    %1 = arith.minsi %arg1, %0 : i32
    %c2 = arith.constant 2 : index
    %2 = memref.load %arg2[%c2] : memref<4xi32, #tpu.memory_space<smem>>
    %3 = arith.cmpi slt, %arg0, %2 : i32
    %c0_i32 = arith.constant 0 : i32
    %4 = arith.select %3, %1, %c0_i32 : i32
    %c0_i32_0 = arith.constant 0 : i32
    %c0_i32_1 = arith.constant 0 : i32
    return %4, %c0_i32_0 : i32, i32
  }
  func.func @transform_2(%arg0: i32, %arg1: i32, %arg2: memref<4xi32, #tpu.memory_space<smem>>) -> (i32, i32) {
    %c0_i32 = arith.constant 0 : i32
    %c0_i32_0 = arith.constant 0 : i32
    return %c0_i32, %arg0 : i32, i32
  }
  func.func @transform_3(%arg0: i32, %arg1: i32, %arg2: memref<4xi32, #tpu.memory_space<smem>>) -> (i32, i32) {
    %c0_i32 = arith.constant 0 : i32
    %c0_i32_0 = arith.constant 0 : i32
    return %c0_i32, %arg0 : i32, i32
  }
}

</mosaic_0001>

<bundles_post_ra>
// kernel: tpu_custom_call.1
= control target key start
LH: loop header
LB: loop body
LE: loop exit
PB: predicated region body
PF: predicated region fallthrough
CT: control target
= control target key end

     0   :  { %s1630_s0 = inlined_call_operand.vmem [shape: s32[4], index: 0, kind: input, shape index: {}]   ;;  %s1631_s1 = inlined_call_operand.vmem [shape: f32[512,4], index: 1, kind: input, shape index: {}]   ;;  %s1632_s2 = inlined_call_operand.vmem [shape: f32[512,4], index: 2, kind: input, shape index: {}]   ;;  %s1633_s3 = inlined_call_operand.vmem [shape: f32[1,512], index: 3, kind: input, shape index: {}]   ;;  %s1634_s4 = inlined_call_operand.hbm [shape: f32[1,512], index: 4, kind: output, shape index: {}]  }
   0x1   :  { %1637 = sst [smem:[#allocation12_spill]] %s1631_s1  ;;  %s9_s17 = sshll.u32 %s1630_s0, 4  ;;  %s10_s17 = int_to_ptr.vmem [resolvable:$true] %s9_s17 }
   0x2   :  { %s1136_s18 = scalar_lea.vmem %s10_s17, 16  ;;  %p1141_p1 = scmp.lt.s32.totalorder %s10_s17, %s10_s17 }
   0x3   :  { %p1137_p0 = scmp.ne.s32.totalorder %s10_s17, %s1136_s18  ;;  %p1142_p2 = scmp.lt.s32.totalorder %s1136_s18, %s1136_s18 }
   0x5   :  { %p1143_p3 = por %p1142_p2, %p1141_p1 }
   0x7   :  { %p1144_p4 = pnand %p1143_p3, %p1137_p0 }
   0x9   :  { %1147 = shalt.err (!%p1144_p4)  }
   0xa   :  { %s1244_s19 = smov [#allocation4]  }
   0xb   :  { %12 = dma.vmem_to_smem %s10_s17, 16, %s1244_s19, [#allocation3] }
   0xc   :  { %1206 = dma.done.wait [#allocation3], 16 }
   0xd   :  { %1207 = vsyncadd [#allocation3], 4294967280 }
   0xe   :  { %14 = sfence }
   0xf   :  { %15 = vsyncpa [#allocation6], 0 }
  0x10   :  { %17 = vsyncpa [#allocation6 + $0x1], 0  ;;  %s1276_s20 = smov 0   ;;  %s1278_s21 = smov 0  }
  0x11   :  { %s1280_s0 = smov 0   ;;  %s1282_s22 = smov 0  }
  0x12   :  { %s1284_s23 = smov 0   ;;  %s1286_s24 = smov 0  }
  0x13   :  { %s1288_s25 = smov 0   ;;  %s1290_s26 = smov 0  }
  0x14 LB: > { %1638 = sst [smem:[#allocation9_spill]] %s1238_s25  ;;  %s837_s27 = sadd.s32 4294967295, %s1242_s26   ;;  %s1242_s26 = sphi %s1290_s26, %s23_s26   ;;  %s1238_s25 = sphi %s1288_s25, %s1648_s25   ;;  %s1234_s24 = sphi %s1286_s24, %s1653_s24   ;;  %s1230_s23 = sphi %s1284_s23, %s1646_s23   ;;  %s1226_s22 = sphi %s1282_s22, %s1652_s22   ;;  %s1222_s0 = sphi %s1280_s0, %s1651_s0   ;;  %s1218_s21 = sphi %s1278_s21, %s1650_s21   ;;  %s1214_s20 = sphi %s1276_s20, %s1649_s20  }
  0x15   : > { %s838_s28 = sadd.s32 4294967294, %s1242_s26   ;;  %s32_s29 = sadd.s32 1, %s1234_s24 }
  0x16   : > { %p33_p5 = scmp.ge.s32.totalorder %s32_s29, 4  ;;  %s35_s30 = sadd.s32 1, %s1238_s25 }
  0x17   : > { %p142_p6 = scmp.ne.s32.totalorder %s1222_s0, %s1218_s21  ;;  %p143_p7 = scmp.eq.s32.totalorder %s837_s27, 15 }
  0x18   : > { %s1655_s29 = smov (%p33_p5, %s32_s29), 0  ;;  %s1657_s30 = smov (!%p33_p5, %s35_s30), %s1238_s25 }
  0x19   : > { %1639 = sst [smem:[#allocation10_spill]] %s1655_s29  ;;  %p1325_p8 = por %p143_p7, %p142_p6 }
  0x1a   : > { %p148_p9 = scmp.ne.s32.totalorder %s1218_s21, %s1214_s20  ;;  %p37_p10 = scmp.ge.s32.totalorder %s1657_s30, 4 }
  0x1b   : > { %p149_p11 = scmp.eq.s32.totalorder %s838_s28, 15  ;;  %p845_p12 = scmp.ge.s32.totalorder %s1242_s26, 1 }
  0x1c   : > { %p203_p13 = scmp.lt.s32.totalorder %s1242_s26, 17  ;;  %s1659_s30 = smov (%p37_p10, %s1657_s30), 0 }
  0x1d   : > { %1641 = sst [smem:[#allocation11_spill]] %s1659_s30  ;;  %p1335_p0 = por %p149_p11, %p148_p9 }
  0x1e   : > { %p204_p1 = pnand %p845_p12, %p203_p13  ;;  %s129_s7 = ssub.s32 %s1238_s25, %s1659_s30 }
  0x1f   : > { %s132_s8 = sadd.s32 1, %s1222_s0  ;;  %p130_p2 = scmp.eq.s32.totalorder %s129_s7, 0 }
  0x20   : > { %207 = sbr.rel (%p204_p1) target bundleno = 442 (0x1ba), region = 32  ;;  %s1347_s11 = sshll.u32 (!%p204_p1), %s1230_s23, 4 }
  0x21   : > { %s1343_s9 = scalar_select %p130_p2, %s1222_s0, %s132_s8  }
  0x22   : > { %p241_p3 = scmp.lt.s32.totalorder (!%p204_p1), %s1347_s11, 63  ;;  %s848_s12 = sld [smem:[#allocation4 + $0x3]] (!%p204_p1) }
  0x23   : > { %p264_p4 = scmp.lt.s32.totalorder (!%p204_p1), %s1230_s23, 3  ;;  %s849_s14 = sld [smem:[#allocation4 + $0x2]] (!%p204_p1) }
  0x24   : > { %s1352_s16 = sld [smem:[#allocation4]] (!%p204_p1)  ;;  %p854_p9 = scmp.ne.s32.totalorder (!%p204_p1), %s1226_s22, 0 }
  0x25   : > { %s242_s13 = scalar_select %p241_p3, %s1347_s11, 63 }
  0x26   : > { %s1643_s1 = sld [smem:[#allocation12_spill]] }
  0x27   : > { %s847_s15 = sshll.u32 %s242_s13, 3  ;;  %s852_s27 = sld [smem:[#allocation4 + $0x1]] }
  0x28   : > { %s1360_s28 = scalar_select %p264_p4, %s1230_s23, 3 }
  0x29   : > { %p247_p5 = scmp.lt.s32.totalorder %s1226_s22, %s848_s12  ;;  %p250_p6 = scmp.lt.s32.totalorder %s1230_s23, %s849_s14 }
  0x2a   : > { %s266_s10 = scalar_lea.vmem %s1633_s3, %s1360_s28 }
  0x2b   : > { %s248_s30 = scalar_select %p247_p5, %s1226_s22, %s848_s12 }
  0x2c   : > { %s1357_s19 = scalar_lea.vmem %s1643_s1, %s847_s15  ;;  %s1644_s1 = sand.u32 1, %s1218_s21  }
  0x2d   : > { %s1661_s30 = smov (!%p250_p6, %s248_s30), 0  ;;  %s1378_s25 = scalar_lea.vmem [#allocation5], %s1644_s1 }
  0x2e   : > { %s850_s13 = sshll.u32 %s1661_s30, 4 }
  0x2f   : > { %p253_p7 = scmp.lt.s32.totalorder %s850_s13, 63  ;;  %273 = sbr.rel (%p854_p9) target bundleno = 54 (0x36), region = 36 }
  0x31   : > { %s1663_s13 = smov (!%p253_p7, %s850_s13), 63 }
  0x32   : > { %s851_s29 = sshll.u32 %s1663_s13, 3 }
  0x33   : > { %s1374_s18 = scalar_lea.vmem %s1632_s2, %s851_s29 }
  0x34   : > { %v1245_v0 = vmov 0.0  }
  0x35   : > { %274 = vst [vmem:[#allocation2] sm:$0x1] %v1245_v0 }
  0x36 PF: > { %p276_p10 = scmp.lt.s32.totalorder %s1226_s22, %s852_s27 }
  0x38   : > { %p277_p11 = pnand %p276_p10, %p250_p6 }
  0x39   : > { %s887_s1 = sshll.u32 (!%p277_p11), %s1226_s22, 7 }
  0x3a   : > { %280 = sbr.rel (%p277_p11) target bundleno = 390 (0x186), region = 40 }
  0x3f   : > { %v296_v1 = vld [vmem:[%s1357_s19 + $0x78] sm:$0xff]  ;;  %vm329_vm0 = vcmask 31744   ;;  %v295_v2 = vld [vmem:[%s1357_s19 + $0x70] sm:$0xff]  ;;  %v294_v5 = vld [vmem:[%s1357_s19 + $0x68] sm:$0xff]  ;;  %v572_v49 = vlaneseq  ;;  %v1500_v62 = vstv %s887_s1 }
  0x40   : > { %v312_v3 = vmul.f32 10.0, %v296_v1  ;;  %v311_v4 = vmul.f32 10.0, %v295_v2  ;;  %v310_v6 = vmul.f32 10.0, %v294_v5  ;;  %v313_v7 = vld [vmem:[%s1374_s18] sm:$0xff]  ;;  %v292_v11 = vld [vmem:[%s1357_s19 + $0x58] sm:$0xff]  ;;  %v291_v13 = vld [vmem:[%s1357_s19 + $0x50] sm:$0xff] }
  0x41   : > { %v293_v8 = vld [vmem:[%s1357_s19 + $0x60] sm:$0xff]  ;;  %972 = vmatprep.mubr.msk.f32.mxu0 %vm329_vm0, %v313_v7  ;;  %v308_v12 = vmul.f32 10.0, %v292_v11  ;;  %v307_v14 = vmul.f32 10.0, %v291_v13  ;;  %v290_v15 = vld [vmem:[%s1357_s19 + $0x48] sm:$0xff]  ;;  %v288_v19 = vld [vmem:[%s1357_s19 + $0x38] sm:$0xff]  ;;  %v1496_v55 = vshrl.u32 %v572_v49, 7  ;;  %v1507_v7 = vstv %s1352_s16 }
  0x42   : > { %940 = vmatprep.subr.msk.mxu0 %vm329_vm0, %v312_v3  ;;  %996 = vmatprep.subr.msk.mxu1 %vm329_vm0, %v312_v3  ;;  %v321_v9 = vld [vmem:[%s1374_s18 + $0x40] sm:$0xff]  ;;  %v309_v10 = vmul.f32 10.0, %v293_v8  ;;  %v306_v16 = vmul.f32 10.0, %v290_v15  ;;  %v304_v20 = vmul.f32 10.0, %v288_v19  ;;  %v287_v21 = vld [vmem:[%s1357_s19 + $0x30] sm:$0xff]  ;;  %v286_v23 = vld [vmem:[%s1357_s19 + $0x28] sm:$0xff] }
  0x43   : > { %941 = vmatpush3.xpose.msk.msra.mxu0 %vm329_vm0, %v312_v3  ;;  %1012 = vmatpush3.xpose.msk.msra.mxu1 %vm329_vm0, %v312_v3  ;;  %v289_v17 = vld [vmem:[%s1357_s19 + $0x40] sm:$0xff]  ;;  %v303_v22 = vmul.f32 10.0, %v287_v21  ;;  %v302_v24 = vmul.f32 10.0, %v286_v23  ;;  %v284_v27 = vld [vmem:[%s1357_s19 + $0x18] sm:$0xff]  ;;  %v283_v29 = vld [vmem:[%s1357_s19 + $0x10] sm:$0xff]  ;;  %v574_v61 = vadd.s32 8, %v1496_v55  ;;  %v590_v0 = vadd.s32 %v1500_v62, %v1496_v55 }
  0x44   : > { %942 = vmatprep.subr.msk.mxu0 %vm329_vm0, %v311_v4  ;;  %997 = vmatprep.subr.msk.mxu1 %vm329_vm0, %v311_v4  ;;  %v305_v18 = vmul.f32 10.0, %v289_v17  ;;  %v285_v25 = vld [vmem:[%s1357_s19 + $0x20] sm:$0xff]  ;;  %v300_v28 = vmul.f32 10.0, %v284_v27  ;;  %v299_v30 = vmul.f32 10.0, %v283_v29  ;;  %v282_v31 = vld [vmem:[%s1357_s19 + $0x8] sm:$0xff]  ;;  %v315_v37 = vld [vmem:[%s1374_s18 + $0x10] sm:$0xff] }
  0x45   : > { %984 = vmatprep.mubr.msk.f32.mxu1 %vm329_vm0, %v321_v9  ;;  %v301_v26 = vmul.f32 10.0, %v285_v25  ;;  %v298_v32 = vmul.f32 10.0, %v282_v31  ;;  %v281_v33 = vld [vmem:[%s1357_s19] sm:$0xff]  ;;  %v314_v35 = vld [vmem:[%s1374_s18 + $0x8] sm:$0xff]  ;;  %v323_v38 = vld [vmem:[%s1374_s18 + $0x50] sm:$0xff]  ;;  %v575_v3 = vadd.s32 16, %v1496_v55  ;;  %vm607_vm1 = vcmp.lt.s32.totalorder %v590_v0, %v1507_v7 }
  0x46   : > { %v297_v34 = vmul.f32 10.0, %v281_v33  ;;  %v322_v36 = vld [vmem:[%s1374_s18 + $0x48] sm:$0xff]  ;;  %v316_v39 = vld [vmem:[%s1374_s18 + $0x18] sm:$0xff]  ;;  %v317_v41 = vld [vmem:[%s1374_s18 + $0x20] sm:$0xff]  ;;  %v576_v8 = vadd.s32 24, %v1496_v55  ;;  %v577_v13 = vadd.s32 32, %v1496_v55 }
  0x47   : > { %943 = vmatpush3.xpose.msk.msra.mxu0 %vm329_vm0, %v311_v4  ;;  %1013 = vmatpush3.xpose.msk.msra.mxu1 %vm329_vm0, %v311_v4  ;;  %v324_v40 = vld [vmem:[%s1374_s18 + $0x58] sm:$0xff]  ;;  %v325_v42 = vld [vmem:[%s1374_s18 + $0x60] sm:$0xff]  ;;  %v318_v43 = vld [vmem:[%s1374_s18 + $0x28] sm:$0xff]  ;;  %v578_v15 = vadd.s32 40, %v1496_v55  ;;  %v583_v49 = vadd.s32 80, %v1496_v55 }
  0x48   : > { %944 = vmatprep.subr.msk.mxu0 %vm329_vm0, %v310_v6  ;;  %998 = vmatprep.subr.msk.mxu1 %vm329_vm0, %v310_v6  ;;  %v326_v44 = vld [vmem:[%s1374_s18 + $0x68] sm:$0xff]  ;;  %v319_v45 = vld [vmem:[%s1374_s18 + $0x30] sm:$0xff]  ;;  %v320_v47 = vld [vmem:[%s1374_s18 + $0x38] sm:$0xff]  ;;  %v593_v17 = vadd.s32 %v1500_v62, %v576_v8  ;;  %v594_v25 = vadd.s32 %v1500_v62, %v577_v13  ;;  %v586_v13 = vadd.s32 104, %v1496_v55 }
  0x49   : > { %v327_v46 = vld [vmem:[%s1374_s18 + $0x70] sm:$0xff]  ;;  %v328_v48 = vld [vmem:[%s1374_s18 + $0x78] sm:$0xff]  ;;  %v595_v29 = vadd.s32 %v1500_v62, %v578_v15 }
  0x4a   : > { %vm610_vm4 = vcmp.lt.s32.totalorder %v593_v17, %v1507_v7  ;;  %vm611_vm5 = vcmp.lt.s32.totalorder %v594_v25, %v1507_v7  ;;  %v603_v25 = vadd.s32 %v1500_v62, %v586_v13 }
  0x4b   : > { %945 = vmatpush3.xpose.msk.msra.mxu0 %vm329_vm0, %v310_v6  ;;  %1014 = vmatpush3.xpose.msk.msra.mxu1 %vm329_vm0, %v310_v6  ;;  %v591_v6 = vadd.s32 %v1500_v62, %v574_v61  ;;  %vm612_vm6 = vcmp.lt.s32.totalorder %v595_v29, %v1507_v7 }
  0x4c   : > { %946 = vmatprep.subr.msk.mxu0 %vm329_vm0, %v309_v10  ;;  %999 = vmatprep.subr.msk.mxu1 %vm329_vm0, %v309_v10  ;;  %vm620_vm14 = vcmp.lt.s32.totalorder %v603_v25, %v1507_v7 }
  0x4d   : > { %vm608_vm2 = vcmp.lt.s32.totalorder %v591_v6, %v1507_v7 }
  0x4f   : > { %947 = vmatpush3.xpose.msk.msra.mxu0 %vm329_vm0, %v309_v10  ;;  %1015 = vmatpush3.xpose.msk.msra.mxu1 %vm329_vm0, %v309_v10 }
  0x50   : > { %948 = vmatprep.subr.msk.mxu0 %vm329_vm0, %v308_v12  ;;  %1000 = vmatprep.subr.msk.mxu1 %vm329_vm0, %v308_v12 }
  0x53   : > { %949 = vmatpush3.xpose.msk.msra.mxu0 %vm329_vm0, %v308_v12  ;;  %1016 = vmatpush3.xpose.msk.msra.mxu1 %vm329_vm0, %v308_v12  ;;  %v592_v12 = vadd.s32 %v1500_v62, %v575_v3 }
  0x54   : > { %950 = vmatprep.subr.msk.mxu0 %vm329_vm0, %v307_v14  ;;  %1001 = vmatprep.subr.msk.mxu1 %vm329_vm0, %v307_v14 }
  0x55   : > { %vm609_vm3 = vcmp.lt.s32.totalorder %v592_v12, %v1507_v7 }
  0x57   : > { %951 = vmatpush3.xpose.msk.msra.mxu0 %vm329_vm0, %v307_v14  ;;  %1017 = vmatpush3.xpose.msk.msra.mxu1 %vm329_vm0, %v307_v14 }
  0x58   : > { %952 = vmatprep.subr.msk.mxu0 %vm329_vm0, %v306_v16  ;;  %1002 = vmatprep.subr.msk.mxu1 %vm329_vm0, %v306_v16 }
  0x5b   : > { %953 = vmatpush3.xpose.msk.msra.mxu0 %vm329_vm0, %v306_v16  ;;  %1018 = vmatpush3.xpose.msk.msra.mxu1 %vm329_vm0, %v306_v16 }
  0x5c   : > { %954 = vmatprep.subr.msk.mxu0 %vm329_vm0, %v305_v18  ;;  %1003 = vmatprep.subr.msk.mxu1 %vm329_vm0, %v305_v18 }
  0x5f   : > { %955 = vmatpush3.xpose.msk.msra.mxu0 %vm329_vm0, %v305_v18  ;;  %1019 = vmatpush3.xpose.msk.msra.mxu1 %vm329_vm0, %v305_v18 }
  0x60   : > { %956 = vmatprep.subr.msk.mxu0 %vm329_vm0, %v304_v20  ;;  %1004 = vmatprep.subr.msk.mxu1 %vm329_vm0, %v304_v20 }
  0x63   : > { %957 = vmatpush3.xpose.msk.msra.mxu0 %vm329_vm0, %v304_v20  ;;  %1020 = vmatpush3.xpose.msk.msra.mxu1 %vm329_vm0, %v304_v20  ;;  %v1246_v20 = vmov 0.0  }
  0x64   : > { %958 = vmatprep.subr.msk.mxu0 %vm329_vm0, %v303_v22  ;;  %1005 = vmatprep.subr.msk.mxu1 %vm329_vm0, %v303_v22  ;;  %v888_v21 = vsel %vm607_vm1, 1.0, %v1246_v20  ;;  %v890_v33 = vsel %vm609_vm3, 1.0, %v1246_v20 }
  0x67   : > { %959 = vmatpush3.xpose.msk.msra.mxu0 %vm329_vm0, %v303_v22  ;;  %1021 = vmatpush3.xpose.msk.msra.mxu1 %vm329_vm0, %v303_v22  ;;  %v579_v22 = vadd.s32 48, %v1496_v55 }
  0x68   : > { %960 = vmatprep.subr.msk.mxu0 %vm329_vm0, %v302_v24  ;;  %1006 = vmatprep.subr.msk.mxu1 %vm329_vm0, %v302_v24 }
  0x6b   : > { %961 = vmatpush3.xpose.msk.msra.mxu0 %vm329_vm0, %v302_v24  ;;  %1022 = vmatpush3.xpose.msk.msra.mxu1 %vm329_vm0, %v302_v24 }
  0x6c   : > { %962 = vmatprep.subr.msk.mxu0 %vm329_vm0, %v301_v26  ;;  %1007 = vmatprep.subr.msk.mxu1 %vm329_vm0, %v301_v26 }
  0x6f   : > { %963 = vmatpush3.xpose.msk.msra.mxu0 %vm329_vm0, %v301_v26  ;;  %1023 = vmatpush3.xpose.msk.msra.mxu1 %vm329_vm0, %v301_v26 }
  0x70   : > { %964 = vmatprep.subr.msk.mxu0 %vm329_vm0, %v300_v28  ;;  %1008 = vmatprep.subr.msk.mxu1 %vm329_vm0, %v300_v28 }
  0x73   : > { %965 = vmatpush3.xpose.msk.msra.mxu0 %vm329_vm0, %v300_v28  ;;  %1024 = vmatpush3.xpose.msk.msra.mxu1 %vm329_vm0, %v300_v28  ;;  %v889_v28 = vsel %vm608_vm2, 1.0, %v1246_v20 }
  0x74   : > { %966 = vmatprep.subr.msk.mxu0 %vm329_vm0, %v299_v30  ;;  %1009 = vmatprep.subr.msk.mxu1 %vm329_vm0, %v299_v30 }
  0x77   : > { %967 = vmatpush3.xpose.msk.msra.mxu0 %vm329_vm0, %v299_v30  ;;  %1025 = vmatpush3.xpose.msk.msra.mxu1 %vm329_vm0, %v299_v30  ;;  %v580_v30 = vadd.s32 56, %v1496_v55 }
  0x78   : > { %968 = vmatprep.subr.msk.mxu0 %vm329_vm0, %v298_v32  ;;  %1010 = vmatprep.subr.msk.mxu1 %vm329_vm0, %v298_v32 }
  0x7b   : > { %969 = vmatpush3.xpose.msk.msra.mxu0 %vm329_vm0, %v298_v32  ;;  %1026 = vmatpush3.xpose.msk.msra.mxu1 %vm329_vm0, %v298_v32 }
  0x7c   : > { %970 = vmatprep.subr.msk.mxu0 %vm329_vm0, %v297_v34  ;;  %1011 = vmatprep.subr.msk.mxu1 %vm329_vm0, %v297_v34 }
  0x7f   : > { %971 = vmatpush3.xpose.msk.msra.mxu0 %vm329_vm0, %v297_v34  ;;  %1027 = vmatpush3.xpose.msk.msra.mxu1 %vm329_vm0, %v297_v34  ;;  %v596_v34 = vadd.s32 %v1500_v62, %v579_v22 }
  0x81   : > { %vm613_vm7 = vcmp.lt.s32.totalorder %v596_v34, %v1507_v7 }
  0x82   : > { %973 = vmatmul.mubr.msk.f32.vlgmr.msra.gmra.mxu0 %vm329_vm0, %v314_v35  ;;  %985 = vmatmul.mubr.msk.f32.vlgmr.msra.gmra.mxu1 %vm329_vm0, %v322_v36  ;;  %v581_v35 = vadd.s32 64, %v1496_v55  ;;  %v894_v0 = vsel %vm613_vm7, 1.0, %v1246_v20 }
  0x83   : > { %975 = vmatprep.mubr.msk.f32.mxu0 %vm329_vm0, %v315_v37  ;;  %987 = vmatprep.mubr.msk.f32.mxu1 %vm329_vm0, %v323_v38 }
  0x86   : > { %976 = vmatmul.mubr.msk.f32.gmra.mxu0 %vm329_vm0, %v316_v39  ;;  %988 = vmatmul.mubr.msk.f32.gmra.mxu1 %vm329_vm0, %v324_v40 }
  0x87   : > { %978 = vmatprep.mubr.msk.f32.mxu0 %vm329_vm0, %v317_v41  ;;  %990 = vmatprep.mubr.msk.f32.mxu1 %vm329_vm0, %v325_v42  ;;  %v891_v41 = vsel %vm610_vm4, 1.0, %v1246_v20  ;;  %v597_v42 = vadd.s32 %v1500_v62, %v580_v30 }
  0x89   : > { %vm614_vm8 = vcmp.lt.s32.totalorder %v597_v42, %v1507_v7 }
  0x8a   : > { %979 = vmatmul.mubr.msk.f32.gmra.mxu0 %vm329_vm0, %v318_v43  ;;  %991 = vmatmul.mubr.msk.f32.gmra.mxu1 %vm329_vm0, %v326_v44  ;;  %v582_v43 = vadd.s32 72, %v1496_v55 }
  0x8b   : > { %981 = vmatprep.mubr.msk.f32.mxu0 %vm329_vm0, %v319_v45  ;;  %993 = vmatprep.mubr.msk.f32.mxu1 %vm329_vm0, %v327_v46 }
  0x8e   : > { %982 = vmatmul.mubr.msk.f32.gmra.mxu0 %vm329_vm0, %v320_v47  ;;  %994 = vmatmul.mubr.msk.f32.gmra.mxu1 %vm329_vm0, %v328_v48  ;;  %v892_v47 = vsel %vm611_vm5, 1.0, %v1246_v20  ;;  %v598_v48 = vadd.s32 %v1500_v62, %v581_v35 }
  0x90   : > { %vm615_vm9 = vcmp.lt.s32.totalorder %v598_v48, %v1507_v7 }
  0x91   : > { %v896_v15 = vsel %vm615_vm9, 1.0, %v1246_v20 }
 0x142   : > { %v974_v50 = vpop.f32.mrf.mxu0  ;;  %v986_v51 = vpop.f32.mrf.mxu1 }
 0x143   : > { %v658_v52 = vmul.f32 1.442695, %v974_v50  ;;  %v674_v26 = vmul.f32 1.442695, %v986_v51 }
 0x144   : > { %v492_v53 = vpop.f32.mrf.mxu0  ;;  %v532_v54 = vpop.f32.mrf.mxu1 }
 0x145   : > { %v656_v56 = vmul.f32 1.442695, %v492_v53  ;;  %1102 = vpow2.f32 %v658_v52  ;;  %v672_v19 = vmul.f32 1.442695, %v532_v54 }
 0x146   : > { %v977_v57 = vpop.f32.mrf.mxu0  ;;  %v989_v58 = vpop.f32.mrf.mxu1 }
 0x147   : > { %1104 = vpow2.f32 %v656_v56  ;;  %v662_v59 = vmul.f32 1.442695, %v977_v57  ;;  %v678_v39 = vmul.f32 1.442695, %v989_v58  ;;  %v893_v57 = vsel %vm612_vm6, 1.0, %v1246_v20 }
 0x148   : > { %v502_v60 = vpop.f32.mrf.mxu0  ;;  %v542_v2 = vpop.f32.mrf.mxu1  ;;  %v599_v58 = vadd.s32 %v1500_v62, %v582_v43 }
 0x149   : > { %v660_v63 = vmul.f32 1.442695, %v502_v60  ;;  %1106 = vpow2.f32 %v662_v59  ;;  %v676_v32 = vmul.f32 1.442695, %v542_v2  ;;  %v584_v59 = vadd.s32 88, %v1496_v55 }
 0x14a   : > { %v980_v1 = vpop.f32.mrf.mxu0  ;;  %v992_v11 = vpop.f32.mrf.mxu1  ;;  %v585_v2 = vadd.s32 96, %v1496_v55  ;;  %vm616_vm10 = vcmp.lt.s32.totalorder %v599_v58, %v1507_v7 }
 0x14b   : > { %1108 = vpow2.f32 %v660_v63  ;;  %v666_v4 = vmul.f32 1.442695, %v980_v1  ;;  %v682_v54 = vmul.f32 1.442695, %v992_v11  ;;  %v600_v1 = vadd.s32 %v1500_v62, %v583_v49 }
 0x14c   : > { %v512_v5 = vpop.f32.mrf.mxu0  ;;  %v552_v23 = vpop.f32.mrf.mxu1  ;;  %v897_v22 = vsel %vm616_vm10, 1.0, %v1246_v20 }
 0x14d   : > { %v664_v9 = vmul.f32 1.442695, %v512_v5  ;;  %1110 = vpow2.f32 %v666_v4  ;;  %v680_v46 = vmul.f32 1.442695, %v552_v23  ;;  %vm617_vm11 = vcmp.lt.s32.totalorder %v600_v1, %v1507_v7 }
 0x14e   : > { %v983_v10 = vpop.f32.mrf.mxu0  ;;  %v995_v36 = vpop.f32.mrf.mxu1 }
 0x14f   : > { %1112 = vpow2.f32 %v664_v9  ;;  %v670_v14 = vmul.f32 1.442695, %v983_v10  ;;  %v686_v6 = vmul.f32 1.442695, %v995_v36  ;;  %v895_v9 = vsel %vm614_vm8, 1.0, %v1246_v20 }
 0x150   : > { %v522_v16 = vpop.f32.mrf.mxu0  ;;  %v562_v50 = vpop.f32.mrf.mxu1  ;;  %v601_v10 = vadd.s32 %v1500_v62, %v584_v59 }
 0x151   : > { %v668_v18 = vmul.f32 1.442695, %v522_v16  ;;  %1114 = vpow2.f32 %v670_v14  ;;  %v684_v63 = vmul.f32 1.442695, %v562_v50  ;;  %v602_v16 = vadd.s32 %v1500_v62, %v585_v2 }
 0x152   : > { %v1103_v24 = vpop.eup %1102  ;;  %vm618_vm12 = vcmp.lt.s32.totalorder %v601_v10, %v1507_v7 }
 0x153   : > { %1116 = vpow2.f32 %v668_v18  ;;  %v689_v38 = vmul.f32 %v1103_v24, %v889_v28  ;;  %v898_v28 = vsel %vm617_vm11, 1.0, %v1246_v20  ;;  %vm619_vm13 = vcmp.lt.s32.totalorder %v602_v16, %v1507_v7 }
 0x154   : > { %v1105_v27 = vpop.eup %1104  ;;  %1118 = vpow2.f32 %v672_v19  ;;  %v587_v19 = vadd.s32 112, %v1496_v55 }
 0x155   : > { %v688_v31 = vmul.f32 %v1105_v27, %v888_v21  ;;  %1120 = vpow2.f32 %v674_v26  ;;  %v588_v26 = vadd.s32 120, %v1496_v55  ;;  %v900_v55 = vsel %vm619_vm13, 1.0, %v1246_v20 }
 0x156   : > { %v1107_v37 = vpop.eup %1106  ;;  %1122 = vpow2.f32 %v676_v32 }
 0x157   : > { %v704_v44 = vadd.f32 %v689_v38, %v688_v31  ;;  %v691_v52 = vmul.f32 %v1107_v37, %v891_v41  ;;  %1124 = vpow2.f32 %v678_v39  ;;  %v604_v31 = vadd.s32 %v1500_v62, %v587_v19 }
 0x158   : > { %v1109_v40 = vpop.eup %1108  ;;  %1126 = vpow2.f32 %v680_v46  ;;  %v605_v36 = vadd.s32 %v1500_v62, %v588_v26  ;;  %v901_v41 = vsel %vm620_vm14, 1.0, %v1246_v20 }
 0x159   : > { %v690_v45 = vmul.f32 %v1109_v40, %v890_v33  ;;  %1128 = vpow2.f32 %v682_v54  ;;  %v899_v33 = vsel %vm618_vm12, 1.0, %v1246_v20  ;;  %vm621_vm15 = vcmp.lt.s32.totalorder %v604_v31, %v1507_v7 }
 0x15a   : > { %v1111_v51 = vpop.eup %1110  ;;  %1130 = vpow2.f32 %v684_v63  ;;  %vm622_vm0 = vcmp.lt.s32.totalorder %v605_v36, %v1507_v7 }
 0x15b   : > { %v705_v53 = vadd.f32 %v704_v44, %v690_v45  ;;  %v693_v4 = vmul.f32 %v1111_v51, %v893_v57  ;;  %1132 = vpow2.f32 %v686_v6  ;;  %v902_v45 = vsel %vm621_vm15, 1.0, %v1246_v20 }
 0x15c   : > { %v1113_v56 = vpop.eup %1112  ;;  %v903_v48 = vsel %vm622_vm0, 1.0, %v1246_v20 }
 0x15d   : > { %v692_v60 = vmul.f32 %v1113_v56, %v892_v47  ;;  %v706_v61 = vadd.f32 %v705_v53, %v691_v52 }
 0x15e   : > { %v1115_v3 = vpop.eup %1114 }
 0x15f   : > { %v707_v5 = vadd.f32 %v706_v61, %v692_v60  ;;  %v695_v17 = vmul.f32 %v1115_v3, %v895_v9  ;;  %v655_v60 = vld [vmem:[#allocation2] sm:$0x1] }
 0x160   : > { %v1117_v8 = vpop.eup %1116 }
 0x161   : > { %v694_v11 = vmul.f32 %v1117_v8, %v894_v0  ;;  %v708_v12 = vadd.f32 %v707_v5, %v693_v4  ;;  %v1119_v14 = vpop.eup %1118 }
 0x162   : > { %v1121_v21 = vpop.eup %1120  ;;  %v696_v24 = vmul.f32 %v1119_v14, %v896_v15 }
 0x163   : > { %v709_v18 = vadd.f32 %v708_v12, %v694_v11  ;;  %v1123_v27 = vpop.eup %1122  ;;  %v697_v29 = vmul.f32 %v1121_v21, %v897_v22 }
 0x164   : > { %v1125_v32 = vpop.eup %1124  ;;  %v698_v34 = vmul.f32 %v1123_v27, %v898_v28 }
 0x165   : > { %v710_v23 = vadd.f32 %v709_v18, %v695_v17  ;;  %v1127_v37 = vpop.eup %1126  ;;  %v699_v38 = vmul.f32 %v1125_v32, %v899_v33 }
 0x166   : > { %v1129_v40 = vpop.eup %1128  ;;  %v700_v42 = vmul.f32 %v1127_v37, %v900_v55 }
 0x167   : > { %v711_v30 = vadd.f32 %v710_v23, %v696_v24  ;;  %v1131_v44 = vpop.eup %1130  ;;  %v701_v46 = vmul.f32 %v1129_v40, %v901_v41 }
 0x168   : > { %v1133_v62 = vpop.eup %1132  ;;  %v702_v49 = vmul.f32 %v1131_v44, %v902_v45 }
 0x169   : > { %v712_v35 = vadd.f32 %v711_v30, %v697_v29  ;;  %v703_v51 = vmul.f32 %v1133_v62, %v903_v48 }
 0x16b   : > { %v713_v39 = vadd.f32 %v712_v35, %v698_v34 }
 0x16d   : > { %v714_v43 = vadd.f32 %v713_v39, %v699_v38 }
 0x16f   : > { %v715_v47 = vadd.f32 %v714_v43, %v700_v42 }
 0x171   : > { %v716_v50 = vadd.f32 %v715_v47, %v701_v46 }
 0x173   : > { %v717_v52 = vadd.f32 %v716_v50, %v702_v49 }
 0x175   : > { %v718_v53 = vadd.f32 %v717_v52, %v703_v51 }
 0x177   : > { %v719_v54 = vrot.slane %v718_v53, 4 }
 0x179   : > { %v720_v56 = vadd.f32 %v719_v54, %v718_v53 }
 0x17b   : > { %v721_v57 = vrot.slane %v720_v56, 2 }
 0x17d   : > { %v722_v58 = vadd.f32 %v721_v57, %v720_v56 }
 0x17f   : > { %v723_v59 = vrot.slane %v722_v58, 1 }
 0x181   : > { %v724_v7 = vadd.f32 %v723_v59, %v722_v58 }
 0x183   : > { %v725_v61 = vadd.f32 %v724_v7, %v655_v60 }
 0x185   : > { %726 = vst [vmem:[#allocation2] sm:$0x1] %v725_v61 }
 0x186 PF: > { %p904_p12 = scmp.ne.s32.totalorder %s1226_s22, 3 }
 0x188   : > { %730 = sbr.rel (%p904_p12) target bundleno = 418 (0x1a2), region = 44 }
 0x18d   : > { %v731_v20 = vld [vmem:[%s266_s10] sm:$0x1] }
 0x18e   : > { %v732_v63 = vld [vmem:[#allocation2] sm:$0x1] }
 0x18f   : > { %v733_v0 = vadd.f32 %v732_v63, %v731_v20 }
 0x191   : > { %1134 = vrcp.f32 %v733_v0 }
 0x19e   : > { %v1135_v1 = vpop.eup %1134 }
 0x19f   : > { %v735_v2 = vmul.f32 %v1135_v1, %v731_v20 }
 0x1a1   : > { %736 = vst [vmem:[%s1378_s25] sm:$0x1] %v735_v2 }
 0x1a2 PF: > { %s748_s22 = scalar_lea.hbm %s1634_s4, %s1347_s11  ;;  %s750_s14 = sshll.u32 %s1378_s25, 4  ;;  %s751_s14 = int_to_ptr.vmem [resolvable:$true] %s750_s14 }
 0x1a3   : > { %s1645_s16 = sand.u32 1, %s1218_s21   ;;  %s1148_s10 = scalar_lea.vmem %s751_s14, 16 }
 0x1a4   : > { %s738_s19 = scalar_lea.sflag [#allocation6], %s1645_s16  ;;  %p1149_p13 = scmp.ne.s32.totalorder %s751_s14, %s1148_s10 }
 0x1a5   : > { %s1247_s27 = smov [#allocation5]  }
 0x1a6   : > { %p1150_p1 = pnand %p1149_p13, %p1325_p8  ;;  %s1152_s28 = sshll.u32 %s1247_s27, 4  ;;  %s1153_s28 = int_to_ptr.vmem [resolvable:$false] %s1152_s28 }
 0x1a7   : > { %s1154_s7 = scalar_lea.vmem %s1153_s28, 32  ;;  %p1155_p3 = scmp.lt.s32.totalorder %s751_s14, %s1153_s28 }
 0x1a8   : > { %p1151_p2 = pneg %p1150_p1  ;;  %p1156_p4 = scmp.lt.s32.totalorder %s1154_s7, %s1148_s10 }
 0x1aa   : > { %p1157_p5 = por %p1156_p4, %p1155_p3 }
 0x1ac   : > { %p1158_p6 = pnand %p1157_p5, %p1151_p2 }
 0x1ae   : > { %1161 = shalt.err (!%p1158_p6)
}
 0x1af   : > { %s1162_s8 = scalar_lea.hbm %s748_s22, 16  ;;  %s1166_s13 = scalar_lea.hbm %s1634_s4, 64 }
 0x1b0   : > { %p1163_p7 = scmp.ne.s32.totalorder %s748_s22, %s1162_s8  ;;  %p1167_p11 = scmp.lt.s32.totalorder %s748_s22, %s1634_s4 }
 0x1b1   : > { %p1168_p12 = scmp.lt.s32.totalorder %s1166_s13, %s1162_s8 }
 0x1b2   : > { %p1164_p9 = pnand %p1163_p7, %p1325_p8 }
 0x1b3   : > { %p1169_p13 = por %p1168_p12, %p1167_p11 }
 0x1b4   : > { %p1165_p10 = pneg %p1164_p9 }
 0x1b6   : > { %p1170_p1 = pnand %p1169_p13, %p1165_p10 }
 0x1b8   : > { %1173 = shalt.err (!%p1170_p1)
}
 0x1b9   : > { %1028 = dma.vmem_to_hbm [thread:$0]  (%p1325_p8), %s751_s14, 16, %s748_s22, %s738_s19  }
 0x1ba PF: > { %p1034_p2 = scmp.ge.s32.totalorder %s1242_s26, 2  ;;  %s762_s18 = sand.u32 1, %s1214_s20  }
 0x1bb   : > { %s763_s1 = scalar_lea.sflag [#allocation6], %s762_s18 }
 0x1bc   : > { %p1031_p3 = pnand %p1034_p2, %p1335_p0 }
 0x1be   : > { %p1032_p4 = pneg %p1031_p3 }
 0x1c0   : > { %1209 = dma.done.wait (%p1032_p4), %s763_s1, 16  }
 0x1c1   : > { %1211 = vsyncadd (%p1032_p4), %s763_s1, 4294967280  ;;  %s23_s26 = sadd.s32 1, %s1242_s26   ;;  %s1646_s23 = sld [smem:[#allocation9_spill]] }
 0x1c2   : > { %p20_p5 = scmp.ge.s32.totalorder %s23_s26, 18   ;;  %s1647_s5 = sld [smem:[#allocation10_spill]] }
 0x1c3   : > { %s1648_s25 = sld [smem:[#allocation11_spill]]  ;;  %s1649_s20 = smov %s1218_s21 }
 0x1c4   : > { %s1650_s21 = smov %s1222_s0  ;;  %s1651_s0 = smov %s1343_s9 }
 0x1c5   : > { %s1652_s22 = smov %s1234_s24  ;;  %22 = sbr.rel (!%p20_p5) target bundleno = 20 (0x14), region = 85 }
 0x1c8   : > { %s1653_s24 = smov %s1647_s5 }
 0x1ca   :  { %767 = vsyncpa [#allocation6], 1 }
 0x1cb   :  { %769 = vsyncpa [#allocation6 + $0x1], 1 }

</bundles_post_ra>
